<compile_context>
chip_gen: v7x
topology: tpu7x:2x2x1
jax: 0.10.0
libtpu: 0.0.40
codegen_flags: <defaults>
</compile_context>

<pallas_src>
import jax
import jax.numpy as jnp
from jax.experimental import pallas as pl
from jax.experimental.pallas import tpu as pltpu

SUBLANE = 8          # sublane multiple for batch tiles
MAX_TILE_B = 4096    # cap on the batch tile of the grid path
NO_GRID_MAX_B = 8192 # below this the whole problem stays VMEM-resident (no grid)


def _round_up(n, m):
    return ((n + m - 1) // m) * m


def _cdiv(a, b):
    return -(-a // b)


def mlp_kernel(x_ref, w1_ref, b1_ref, w2_ref, b2_ref, o_ref):
    # layer1: [tB, in] @ [in, hidden] -> f32 accumulate; bias + ReLU in f32.
    h = jnp.dot(x_ref[...], w1_ref[...], preferred_element_type=jnp.float32)
    h = jnp.maximum(h + b1_ref[...], 0.0)
    # layer2: [tB, hidden] @ [hidden, out] -> f32 accumulate; bias in f32.
    # Narrow h to the MXU operand dtype only (no-op when w2 is f32).
    y = jnp.dot(h.astype(w2_ref.dtype), w2_ref[...],
                preferred_element_type=jnp.float32)
    o_ref[...] = (y + b2_ref[...]).astype(o_ref.dtype)


def mlp_forward(x, w1, b1, w2, b2, *, mxu_dtype=jnp.bfloat16, force_grid=False):
    """Pallas forward for  y = relu(x @ w1 + b1) @ w2 + b2.

    x : [B, input_dim]     w1: [input_dim, hidden]   b1: [1, hidden]
    w2: [hidden, output_dim]   b2: [1, output_dim]   -> [B, output_dim] (f32)
    """
    B, input_dim = x.shape
    hidden = w1.shape[1]
    output_dim = w2.shape[1]
    out_dtype = jnp.float32

    # MXU operands in bf16 (v6e/v7x full-rate MXU, half the DMA bytes);
    # biases / accumulation / elementwise stay f32 (v5e-safe).
    if mxu_dtype is not None:
        x = x.astype(mxu_dtype)
        w1 = w1.astype(mxu_dtype)
        w2 = w2.astype(mxu_dtype)
    b1 = b1.astype(jnp.float32)
    b2 = b2.astype(jnp.float32)

    if (not force_grid) and B <= NO_GRID_MAX_B:
        # Small/medium batch: everything VMEM-resident, no grid, no pipeline
        # machinery (compute is negligible; a 1-2 step grid is pure overhead).
        return pl.pallas_call(
            mlp_kernel,
            out_shape=jax.ShapeDtypeStruct((B, output_dim), out_dtype),
            in_specs=[pl.BlockSpec(memory_space=pltpu.MemorySpace.VMEM)] * 5,
            out_specs=pl.BlockSpec(memory_space=pltpu.MemorySpace.VMEM),
        )(x, w1, b1, w2, b2)

    # Large batch: tile only the batch axis.  Pad rows to the sublane multiple
    # (8) only -- the ragged last block is masked by the pipeline (OOB writes
    # dropped) and sliced off below.
    B_pad = _round_up(B, SUBLANE)
    if B_pad != B:
        x = jnp.pad(x, ((0, B_pad - B), (0, 0)))

    # Pick the tile: as large as possible (per-step HBM traffic is far below
    # the fixed per-step overhead) with an even step count so v7x's two
    # TensorCores get balanced work.
    steps = _cdiv(B_pad, MAX_TILE_B)
    if steps % 2:
        steps += 1
    tile_b = _round_up(_cdiv(B_pad, steps), SUBLANE)
    grid = (_cdiv(B_pad, tile_b),)

    out = pl.pallas_call(
        mlp_kernel,
        out_shape=jax.ShapeDtypeStruct((B_pad, output_dim), out_dtype),
        grid=grid,
        in_specs=[
            pl.BlockSpec((tile_b, input_dim), lambda i: (i, 0)),
            # Weights / biases stay VMEM-resident across steps (constant maps).
            pl.BlockSpec((input_dim, hidden), lambda i: (0, 0)),
            pl.BlockSpec((1, hidden), lambda i: (0, 0)),
            pl.BlockSpec((hidden, output_dim), lambda i: (0, 0)),
            pl.BlockSpec((1, output_dim), lambda i: (0, 0)),
        ],
        out_specs=pl.BlockSpec((tile_b, output_dim), lambda i: (i, 0)),
        compiler_params=pltpu.CompilerParams(
            dimension_semantics=("parallel",)),
    )(x, w1, b1, w2, b2)
    return out[:B]


def reference_mlp(x, w1, b1, w2, b2, mxu_dtype=None):
    """Pure-JAX reference.  If mxu_dtype is given, matmul operands are rounded
    to it (accumulation stays f32), matching the kernel's bf16-MXU path."""
    def q(a):
        return a.astype(mxu_dtype).astype(jnp.float32) if mxu_dtype else a
    h = jnp.maximum(jnp.dot(q(x), q(w1)) + b1, 0.0)
    return jnp.dot(q(h), q(w2)) + b2


if __name__ == "__main__":
    # Module hyperparameters (policy_gradient MLP: hidden_dim=128).
    input_dim = 8      # e.g. LunarLander-style observation dim
    output_dim = 4     # action dim
    hidden_dim = 128
    batch = 8

    key = jax.random.PRNGKey(0)
    kx, k1, k2, k3, k4 = jax.random.split(key, 5)

    # Deterministic init matching nn.Linear's U(-1/sqrt(fan_in), 1/sqrt(fan_in)).
    bound1 = 1.0 / jnp.sqrt(jnp.float32(input_dim))
    bound2 = 1.0 / jnp.sqrt(jnp.float32(hidden_dim))

    x = jax.random.normal(kx, (batch, input_dim), dtype=jnp.float32)
    w1 = jax.random.uniform(k1, (input_dim, hidden_dim),
                            minval=-bound1, maxval=bound1, dtype=jnp.float32)
    b1 = jax.random.uniform(k2, (1, hidden_dim),
                            minval=-bound1, maxval=bound1, dtype=jnp.float32)
    w2 = jax.random.uniform(k3, (hidden_dim, output_dim),
                            minval=-bound2, maxval=bound2, dtype=jnp.float32)
    b2 = jax.random.uniform(k4, (1, output_dim),
                            minval=-bound2, maxval=bound2, dtype=jnp.float32)

    # 1) Small batch, default bf16-MXU path (no grid).
    out = jax.block_until_ready(mlp_forward(x, w1, b1, w2, b2))
    ref_bf16 = reference_mlp(x, w1, b1, w2, b2, mxu_dtype=jnp.bfloat16)
    assert out.shape == (batch, output_dim), out.shape
    assert jnp.allclose(out, ref_bf16, atol=2e-3, rtol=2e-3), "mismatch (bf16, no-grid)"

    # 2) Small batch, pure-f32 path -> exact module semantics at tight tolerance.
    out_f32 = jax.block_until_ready(mlp_forward(x, w1, b1, w2, b2, mxu_dtype=None))
    ref_f32 = reference_mlp(x, w1, b1, w2, b2)
    assert jnp.allclose(out_f32, ref_f32, atol=1e-5, rtol=1e-5), "mismatch (f32, no-grid)"

    # 3) Batch-tiled grid path (forced, so the test stays small): exercises
    #    resident weights, even step count, and the ragged last block.
    big_batch = 600
    xb = jax.random.normal(kx, (big_batch, input_dim), dtype=jnp.float32)
    out_b = jax.block_until_ready(
        mlp_forward(xb, w1, b1, w2, b2, force_grid=True))
    ref_b = reference_mlp(xb, w1, b1, w2, b2, mxu_dtype=jnp.bfloat16)
    assert out_b.shape == (big_batch, output_dim), out_b.shape
    assert jnp.allclose(out_b, ref_b, atol=2e-3, rtol=2e-3), "mismatch (bf16, grid)"

    print("KERNEL_OK")
</pallas_src>

<mosaic_0001>
module attributes {stable_mosaic.version = 11 : i64} {
  func.func @mlp_kernel(%arg0: memref<8x8xbf16, #tpu.memory_space<vmem>>, %arg1: memref<8x128xbf16, #tpu.memory_space<vmem>>, %arg2: memref<1x128xf32, #tpu.memory_space<vmem>>, %arg3: memref<128x4xbf16, #tpu.memory_space<vmem>>, %arg4: memref<1x4xf32, #tpu.memory_space<vmem>>, %arg5: memref<8x4xf32, #tpu.memory_space<vmem>>) attributes {dimension_semantics = [], scalar_prefetch = 0 : i64, scratch_operands = 0 : i64, tpu.core_type = #tpu.core_type<tc>} {
    %c0 = arith.constant 0 : index
    %c0_0 = arith.constant 0 : index
    %0 = vector.load %arg0[%c0, %c0_0] : memref<8x8xbf16, #tpu.memory_space<vmem>>, vector<8x8xbf16>
    %c0_1 = arith.constant 0 : index
    %c0_2 = arith.constant 0 : index
    %1 = vector.load %arg1[%c0_1, %c0_2] : memref<8x128xbf16, #tpu.memory_space<vmem>>, vector<8x128xbf16>
    %cst = arith.constant dense<0.000000e+00> : vector<8x128xf32>
    %2 = tpu.matmul %0, %1, %cst {dimension_numbers = #tpu.dot_dimension_numbers<[1], [0], [0], [1], [0, 0, 1, 1], [], []>} : vector<8x8xbf16>, vector<8x128xbf16>, vector<8x128xf32> -> vector<8x128xf32>
    %c0_3 = arith.constant 0 : index
    %c0_4 = arith.constant 0 : index
    %3 = vector.load %arg2[%c0_3, %c0_4] : memref<1x128xf32, #tpu.memory_space<vmem>>, vector<1x128xf32>
    %4 = vector.broadcast %3 : vector<1x128xf32> to vector<8x128xf32>
    %5 = arith.addf %2, %4 : vector<8x128xf32>
    %cst_5 = arith.constant 0.000000e+00 : f32
    %6 = vector.broadcast %cst_5 : f32 to vector<8x128xf32>
    %7 = arith.maximumf %5, %6 : vector<8x128xf32>
    %8 = arith.truncf %7 : vector<8x128xf32> to vector<8x128xbf16>
    %c0_6 = arith.constant 0 : index
    %c0_7 = arith.constant 0 : index
    %9 = vector.load %arg3[%c0_6, %c0_7] : memref<128x4xbf16, #tpu.memory_space<vmem>>, vector<128x4xbf16>
    %cst_8 = arith.constant dense<0.000000e+00> : vector<8x4xf32>
    %10 = tpu.matmul %8, %9, %cst_8 {dimension_numbers = #tpu.dot_dimension_numbers<[1], [0], [0], [1], [0, 0, 1, 1], [], []>} : vector<8x128xbf16>, vector<128x4xbf16>, vector<8x4xf32> -> vector<8x4xf32>
    %c0_9 = arith.constant 0 : index
    %c0_10 = arith.constant 0 : index
    %11 = vector.load %arg4[%c0_9, %c0_10] : memref<1x4xf32, #tpu.memory_space<vmem>>, vector<1x4xf32>
    %12 = vector.broadcast %11 : vector<1x4xf32> to vector<8x4xf32>
    %13 = arith.addf %10, %12 : vector<8x4xf32>
    %c0_11 = arith.constant 0 : index
    %c0_12 = arith.constant 0 : index
    %14 = vector.load %arg5[%c0_11, %c0_12] : memref<8x4xf32, #tpu.memory_space<vmem>>, vector<8x4xf32>
    tpu.vector_store %arg5[%c0_11, %c0_12], %13 {strides = array<i32>} : memref<8x4xf32, #tpu.memory_space<vmem>>, vector<8x4xf32>,
    return
  }
}

</mosaic_0001>

<bundles_post_ra>
// kernel: tpu_custom_call.1
= control target key start
LH: loop header
LB: loop body
LE: loop exit
PB: predicated region body
PF: predicated region fallthrough
CT: control target
= control target key end

     0   :  { %vm34_vm0 = vcmask 1043456   ;;  %v255_v0 = vmov 0.0   ;;  %vm256_vm1 = vmmov 0   ;;  %vm30_vm2 = vcmask 64512   ;;  %s326_s1 = inlined_call_operand.vmem [shape: bf16[8,128], index: 1, kind: input, shape index: {}]   ;;  %s327_s0 = inlined_call_operand.vmem [shape: bf16[8,8], index: 0, kind: input, shape index: {}]   ;;  %s328_s3 = inlined_call_operand.vmem [shape: bf16[128,4], index: 3, kind: input, shape index: {}]   ;;  %s329_s2 = inlined_call_operand.vmem [shape: f32[1,128], index: 2, kind: input, shape index: {}]   ;;  %s330_s4 = inlined_call_operand.vmem [shape: f32[1,4], index: 4, kind: input, shape index: {}]   ;;  %s331_s5 = inlined_call_operand.vmem [shape: f32[8,4], index: 5, kind: output, shape index: {}]  }
   0x1   :  { %219 = vmatprep.subr.bf16.mxu0 %v255_v0  ;;  %v22_v1 = vld [vmem:[%s326_s1] sm:$0xf]  ;;  %221 = vmatprep.mubr.msk.bf16.mxu0 %vm256_vm1, %v255_v0  ;;  %v248_v5 = vld [vmem:[%s328_s3 + $0x8] sm:$0xff]   ;;  %v249_v6 = vld [vmem:[%s328_s3 + $0x10] sm:$0xff]   ;;  %vm191_vm3 = vcmask 31744  }
   0x2   :  { %v36_v2 = vsel %vm34_vm0, %v22_v1, 0  ;;  %225 = vmatprep.subr.bf16.mxu1 %v255_v0  ;;  %v247_v3 = vld [vmem:[%s328_s3] sm:$0xff]   ;;  %241 = vmatprep.mubr.msk.bf16.mxu1 %vm256_vm1, %v255_v0  ;;  %v250_v7 = vld [vmem:[%s328_s3 + $0x18] sm:$0xff]   ;;  %v252_v9 = vld [vmem:[%s328_s3 + $0x28] sm:$0xff]  }
   0x3   :  { %220 = vmatpush3.bf16.msra.mxu0 %v36_v2  ;;  %v21_v4 = vld [vmem:[%s327_s0] sm:$0xf]  ;;  %226 = vmatpush3.bf16.msra.mxu1 %v247_v3  ;;  %v253_v10 = vld [vmem:[%s328_s3 + $0x30] sm:$0xff]   ;;  %v254_v11 = vld [vmem:[%s328_s3 + $0x38] sm:$0xff]  }
   0x4   :  { %227 = vmatprep.subr.bf16.mxu1 %v255_v0  ;;  %v251_v8 = vld [vmem:[%s328_s3 + $0x20] sm:$0xff]  }
   0x5   :  { %v197_v12 = vld [vmem:[%s329_s2] ss:$0 sm:$0xff] }
   0x6   :  { %222 = vmatmul.mubr.msk.bf16.vlgmr.msra.gmra.mrb[0].mxu0 %vm30_vm2, %v21_v4  ;;  %v199_v20 = vld [vmem:[%s330_s4] ss:$0 sm:$0xff] }
   0x7   :  { %228 = vmatpush3.bf16.msra.mxu1 %v248_v5 }
   0x8   :  { %229 = vmatprep.subr.bf16.mxu1 %v255_v0 }
   0xb   :  { %230 = vmatpush3.bf16.msra.mxu1 %v249_v6 }
   0xc   :  { %231 = vmatprep.subr.bf16.mxu1 %v255_v0 }
   0xf   :  { %232 = vmatpush3.bf16.msra.mxu1 %v250_v7 }
  0x10   :  { %233 = vmatprep.subr.bf16.mxu1 %v255_v0 }
  0x13   :  { %234 = vmatpush3.bf16.msra.mxu1 %v251_v8 }
  0x14   :  { %235 = vmatprep.subr.bf16.mxu1 %v255_v0 }
  0x17   :  { %236 = vmatpush3.bf16.msra.mxu1 %v252_v9 }
  0x18   :  { %237 = vmatprep.subr.bf16.mxu1 %v255_v0 }
  0x1b   :  { %238 = vmatpush3.bf16.msra.mxu1 %v253_v10 }
  0x1c   :  { %239 = vmatprep.subr.bf16.mxu1 %v255_v0 }
  0x1f   :  { %240 = vmatpush3.bf16.msra.mxu1 %v254_v11 }
  0xd9   :  { %v72_v13 = vpop.f32.mrb[0].mxu0 }
  0xda   :  { %v73_v14 = vadd.f32 %v197_v12, %v72_v13  ;;  %v223_v15 = vpop.f32.mrb[1].mxu0 }
  0xdb   :  { %v75_v16 = vpop.f32.mrb[2].mxu0 }
  0xdc   :  { %v78_v17 = vmax.f32 %v73_v14, 0.0  ;;  %v224_v18 = vpop.f32.mrb[3].mxu0 }
  0xde   :  { %v79_v19 = vpack.c.bf16 %v78_v17, %v78_v17 }
  0xe0   :  { %242 = vmatmul.mubr.bf16.vlgmr.msra.gmra.mrb[0].mxu1 %v79_v19 }
 0x1b3   :  { %v185_v21 = vpop.f32.mrb[0].mxu1 }
 0x1b4   :  { %v186_v22 = vadd.f32 %v199_v20, %v185_v21  ;;  %v243_v23 = vpop.f32.mrb[1].mxu1 }
 0x1b5   :  { %v188_v24 = vpop.f32.mrb[2].mxu1 }
 0x1b6   :  { %192 = vst.msk [vmem:[%s331_s5] sm:$0xff] %vm191_vm3, %v186_v22  ;;  %v244_v25 = vpop.f32.mrb[3].mxu1 }

</bundles_post_ra>
